<compile_context>
chip_gen: v7x
topology: tpu7x:2x2x1
jax: 0.10.0
libtpu: 0.0.40
codegen_flags: <defaults>
</compile_context>

<pallas_src>
import jax
import jax.numpy as jnp
from jax.experimental import pallas as pl
from jax.experimental.pallas import tpu as pltpu

HIDDEN = 200        # logical hidden width (matches the PyTorch module)
HIDDEN_PAD = 256    # padded to the native 128-lane / MXU tile width
OUT_PAD = 128       # pad n_actions to a full lane tile -> unmasked output stores
NEG_BIG = -1e30     # fc5 bias for padded lanes -> exp() underflows to exactly 0


def _round_up(n, m):
    return (n + m - 1) // m * m


def _net_kernel(x_ref,
                w1_ref, b1_ref, w2_ref, b2_ref, w3_ref, b3_ref,
                w4_ref, b4_ref, w5_ref, b5_ref, wo_ref, bo_ref,
                o_ref):
    """One batch tile of the full MLP. Weights arrive as bf16 VMEM-resident
    tiles and are widened once per tile; activations are f32 throughout."""
    x = x_ref[...]  # already f32, no redundant cast

    def linear(h, w_ref, b_ref):
        return (jnp.dot(h, w_ref[...].astype(jnp.float32),
                        preferred_element_type=jnp.float32)
                + b_ref[...])

    h = jnp.maximum(linear(x, w1_ref, b1_ref), 0.0)
    h = jnp.maximum(linear(h, w2_ref, b2_ref), 0.0)
    h = jnp.maximum(linear(h, w3_ref, b3_ref), 0.0)
    h = jnp.maximum(linear(h, w4_ref, b4_ref), 0.0)
    h = linear(h, w5_ref, b5_ref)            # padded lanes carry bias -1e30

    # softmax over dim=1 (numerically stable); normalization deferred across
    # the final matmul (per-row scalar commutes through the contraction).
    m = jnp.max(h, axis=-1, keepdims=True)
    e = jnp.exp(h - m)                       # padded lanes -> exactly 0
    s = jnp.sum(e, axis=-1, keepdims=True)
    unnorm = jnp.dot(e, wo_ref[...].astype(jnp.float32),
                     preferred_element_type=jnp.float32)
    out = unnorm * pl.reciprocal(s, approx=True) + bo_ref[...]
    o_ref[...] = out.astype(o_ref.dtype)


def net_forward(x, pp, n_actions):
    """x: (B, n_states) f32; pp: padded params (bf16 weights, f32 biases)."""
    B, n_states = x.shape
    op = pp["wo"].shape[1]       # 128

    # Tile as big as comfortably fits VMEM: one tile (one pipeline step) for
    # batches up to 512, 256-row streaming tiles beyond that (weights stay
    # resident, activation tiles are double-buffered).
    if B <= 512:
        TB = _round_up(B, 8)     # sublane-aligned single tile
    else:
        TB = 256
    B_pad = _round_up(B, TB)
    if B_pad != B:
        x = jnp.pad(x, ((0, B_pad - B), (0, 0)))

    weights = (pp["w1"], pp["b1"], pp["w2"], pp["b2"], pp["w3"], pp["b3"],
               pp["w4"], pp["b4"], pp["w5"], pp["b5"], pp["wo"], pp["bo"])

    def resident(a):
        # Same block index every grid step -> loaded once, stays in VMEM.
        return pl.BlockSpec(a.shape, lambda i: (0, 0))

    out = pl.pallas_call(
        _net_kernel,
        out_shape=jax.ShapeDtypeStruct((B_pad, op), jnp.float32),
        grid=(B_pad // TB,),
        in_specs=[pl.BlockSpec((TB, n_states), lambda i: (i, 0))]
                 + [resident(a) for a in weights],
        out_specs=pl.BlockSpec((TB, op), lambda i: (i, 0)),
        compiler_params=pltpu.CompilerParams(
            dimension_semantics=("parallel",)),   # megacore split on v7x
    )(x, *weights)

    return out[:B, :n_actions]


def init_params(key, n_states, n_actions, hidden=HIDDEN):
    """Deterministic init mimicking nn.Linear default (uniform +/- 1/sqrt(fan_in))."""
    dims = [(n_states, hidden)] + [(hidden, hidden)] * 4 + [(hidden, n_actions)]
    names = ["1", "2", "3", "4", "5", "o"]
    params = {}
    for name, (fan_in, fan_out) in zip(names, dims):
        key, kw, kb = jax.random.split(key, 3)
        bound = 1.0 / jnp.sqrt(jnp.float32(fan_in))
        params["w" + name] = jax.random.uniform(
            kw, (fan_in, fan_out), jnp.float32, -bound, bound)
        params["b" + name] = jax.random.uniform(
            kb, (1, fan_out), jnp.float32, -bound, bound)
    return params


def prepare_params(params, weight_dtype=jnp.bfloat16):
    """Pad hidden 200->256 and n_actions->128 (lane-dense) and store weight
    matrices in bf16. Padded fc5 bias lanes get -1e30 so softmax assigns them
    probability exactly 0; all other padding is zeros (mathematically inert)."""
    n_states = params["w1"].shape[0]

    def pad_w(w, rows, cols):
        return jnp.pad(w, ((0, rows - w.shape[0]), (0, cols - w.shape[1])))

    def pad_b(b, cols, fill=0.0):
        return jnp.pad(b, ((0, 0), (0, cols - b.shape[1])), constant_values=fill)

    pp = {
        "w1": pad_w(params["w1"], n_states, HIDDEN_PAD).astype(weight_dtype),
        "b1": pad_b(params["b1"], HIDDEN_PAD),
        "w2": pad_w(params["w2"], HIDDEN_PAD, HIDDEN_PAD).astype(weight_dtype),
        "b2": pad_b(params["b2"], HIDDEN_PAD),
        "w3": pad_w(params["w3"], HIDDEN_PAD, HIDDEN_PAD).astype(weight_dtype),
        "b3": pad_b(params["b3"], HIDDEN_PAD),
        "w4": pad_w(params["w4"], HIDDEN_PAD, HIDDEN_PAD).astype(weight_dtype),
        "b4": pad_b(params["b4"], HIDDEN_PAD),
        "w5": pad_w(params["w5"], HIDDEN_PAD, HIDDEN_PAD).astype(weight_dtype),
        "b5": pad_b(params["b5"], HIDDEN_PAD, fill=NEG_BIG),
        "wo": pad_w(params["wo"], HIDDEN_PAD, OUT_PAD).astype(weight_dtype),
        "bo": pad_b(params["bo"], OUT_PAD),
    }
    return pp


def _reference(x, p):
    # Pure-JAX reference; weights rounded through bf16 exactly like the kernel
    # sees them, so the comparison is apples-to-apples.
    def rw(w):
        return w.astype(jnp.bfloat16).astype(jnp.float32)
    h = jnp.maximum(x @ rw(p["w1"]) + p["b1"], 0.0)
    h = jnp.maximum(h @ rw(p["w2"]) + p["b2"], 0.0)
    h = jnp.maximum(h @ rw(p["w3"]) + p["b3"], 0.0)
    h = jnp.maximum(h @ rw(p["w4"]) + p["b4"], 0.0)
    h = h @ rw(p["w5"]) + p["b5"]
    h = jax.nn.softmax(h, axis=1)
    return h @ rw(p["wo"]) + p["bo"]


if __name__ == "__main__":
    key = jax.random.PRNGKey(0)
    n_states, n_actions = 4, 2

    key, kx = jax.random.split(key)
    params = init_params(key, n_states, n_actions)
    padded = prepare_params(params)

    # Exercise all paths: small single tile, large single tile (one pipeline
    # step), and the multi-step streaming grid (weights resident across steps).
    for batch in (8, 256, 640):
        kx, kb = jax.random.split(kx)
        x = jax.random.normal(kb, (batch, n_states), jnp.float32)

        out = jax.block_until_ready(net_forward(x, padded, n_actions))
        ref = _reference(x, params)

        assert out.shape == (batch, n_actions)
        # Tolerance accounts for the EUP approx reciprocal (<~1e-4 rel on a
        # term of magnitude <~0.07) and MXU vs XLA accumulation order.
        assert jnp.allclose(out, ref, atol=2e-4, rtol=2e-4), \
            f"mismatch vs reference at batch={batch}"

    print("KERNEL_OK")
</pallas_src>

<mosaic_0001>
module attributes {stable_mosaic.version = 11 : i64} {
  func.func @_net_kernel(%arg0: i32, %arg1: memref<8x4xf32, #tpu.memory_space<vmem>>, %arg2: memref<4x256xbf16, #tpu.memory_space<vmem>>, %arg3: memref<1x256xf32, #tpu.memory_space<vmem>>, %arg4: memref<256x256xbf16, #tpu.memory_space<vmem>>, %arg5: memref<1x256xf32, #tpu.memory_space<vmem>>, %arg6: memref<256x256xbf16, #tpu.memory_space<vmem>>, %arg7: memref<1x256xf32, #tpu.memory_space<vmem>>, %arg8: memref<256x256xbf16, #tpu.memory_space<vmem>>, %arg9: memref<1x256xf32, #tpu.memory_space<vmem>>, %arg10: memref<256x256xbf16, #tpu.memory_space<vmem>>, %arg11: memref<1x256xf32, #tpu.memory_space<vmem>>, %arg12: memref<256x128xbf16, #tpu.memory_space<vmem>>, %arg13: memref<1x128xf32, #tpu.memory_space<vmem>>, %arg14: memref<8x128xf32, #tpu.memory_space<vmem>>) attributes {dimension_semantics = [#tpu.dimension_semantics<parallel>], iteration_bounds = array<i64: 1>, scalar_prefetch = 0 : i64, scratch_operands = 0 : i64, tpu.core_type = #tpu.core_type<tc>, window_params = [{transform_indices = @transform_0, window_bounds = array<i64: 8, 4>}, {pipeline_mode = #tpu.pipeline_mode<synchronous>, transform_indices = @transform_1, window_bounds = array<i64: 4, 256>}, {pipeline_mode = #tpu.pipeline_mode<synchronous>, transform_indices = @transform_2, window_bounds = array<i64: 1, 256>}, {pipeline_mode = #tpu.pipeline_mode<synchronous>, transform_indices = @transform_3, window_bounds = array<i64: 256, 256>}, {pipeline_mode = #tpu.pipeline_mode<synchronous>, transform_indices = @transform_4, window_bounds = array<i64: 1, 256>}, {pipeline_mode = #tpu.pipeline_mode<synchronous>, transform_indices = @transform_5, window_bounds = array<i64: 256, 256>}, {pipeline_mode = #tpu.pipeline_mode<synchronous>, transform_indices = @transform_6, window_bounds = array<i64: 1, 256>}, {pipeline_mode = #tpu.pipeline_mode<synchronous>, transform_indices = @transform_7, window_bounds = array<i64: 256, 256>}, {pipeline_mode = #tpu.pipeline_mode<synchronous>, transform_indices = @transform_8, window_bounds = array<i64: 1, 256>}, {pipeline_mode = #tpu.pipeline_mode<synchronous>, transform_indices = @transform_9, window_bounds = array<i64: 256, 256>}, {pipeline_mode = #tpu.pipeline_mode<synchronous>, transform_indices = @transform_10, window_bounds = array<i64: 1, 256>}, {pipeline_mode = #tpu.pipeline_mode<synchronous>, transform_indices = @transform_11, window_bounds = array<i64: 256, 128>}, {pipeline_mode = #tpu.pipeline_mode<synchronous>, transform_indices = @transform_12, window_bounds = array<i64: 1, 128>}, {transform_indices = @transform_13, window_bounds = array<i64: 8, 128>}]} {
    %c0 = arith.constant 0 : index
    %c0_0 = arith.constant 0 : index
    %0 = vector.load %arg1[%c0, %c0_0] : memref<8x4xf32, #tpu.memory_space<vmem>>, vector<8x4xf32>
    %c0_1 = arith.constant 0 : index
    %c0_2 = arith.constant 0 : index
    %1 = vector.load %arg2[%c0_1, %c0_2] : memref<4x256xbf16, #tpu.memory_space<vmem>>, vector<4x256xbf16>
    %2 = arith.extf %1 : vector<4x256xbf16> to vector<4x256xf32>
    %cst = arith.constant dense<0.000000e+00> : vector<8x256xf32>
    %3 = tpu.matmul %0, %2, %cst {dimension_numbers = #tpu.dot_dimension_numbers<[1], [0], [0], [1], [0, 0, 1, 1], [], []>} : vector<8x4xf32>, vector<4x256xf32>, vector<8x256xf32> -> vector<8x256xf32>
    %c0_3 = arith.constant 0 : index
    %c0_4 = arith.constant 0 : index
    %4 = vector.load %arg3[%c0_3, %c0_4] : memref<1x256xf32, #tpu.memory_space<vmem>>, vector<1x256xf32>
    %5 = vector.broadcast %4 : vector<1x256xf32> to vector<8x256xf32>
    %6 = arith.addf %3, %5 : vector<8x256xf32>
    %cst_5 = arith.constant 0.000000e+00 : f32
    %7 = vector.broadcast %cst_5 : f32 to vector<8x256xf32>
    %8 = arith.maximumf %6, %7 : vector<8x256xf32>
    %c0_6 = arith.constant 0 : index
    %c0_7 = arith.constant 0 : index
    %9 = vector.load %arg4[%c0_6, %c0_7] : memref<256x256xbf16, #tpu.memory_space<vmem>>, vector<256x256xbf16>
    %10 = arith.extf %9 : vector<256x256xbf16> to vector<256x256xf32>
    %cst_8 = arith.constant dense<0.000000e+00> : vector<8x256xf32>
    %11 = tpu.matmul %8, %10, %cst_8 {dimension_numbers = #tpu.dot_dimension_numbers<[1], [0], [0], [1], [0, 0, 1, 1], [], []>} : vector<8x256xf32>, vector<256x256xf32>, vector<8x256xf32> -> vector<8x256xf32>
    %c0_9 = arith.constant 0 : index
    %c0_10 = arith.constant 0 : index
    %12 = vector.load %arg5[%c0_9, %c0_10] : memref<1x256xf32, #tpu.memory_space<vmem>>, vector<1x256xf32>
    %13 = vector.broadcast %12 : vector<1x256xf32> to vector<8x256xf32>
    %14 = arith.addf %11, %13 : vector<8x256xf32>
    %cst_11 = arith.constant 0.000000e+00 : f32
    %15 = vector.broadcast %cst_11 : f32 to vector<8x256xf32>
    %16 = arith.maximumf %14, %15 : vector<8x256xf32>
    %c0_12 = arith.constant 0 : index
    %c0_13 = arith.constant 0 : index
    %17 = vector.load %arg6[%c0_12, %c0_13] : memref<256x256xbf16, #tpu.memory_space<vmem>>, vector<256x256xbf16>
    %18 = arith.extf %17 : vector<256x256xbf16> to vector<256x256xf32>
    %cst_14 = arith.constant dense<0.000000e+00> : vector<8x256xf32>
    %19 = tpu.matmul %16, %18, %cst_14 {dimension_numbers = #tpu.dot_dimension_numbers<[1], [0], [0], [1], [0, 0, 1, 1], [], []>} : vector<8x256xf32>, vector<256x256xf32>, vector<8x256xf32> -> vector<8x256xf32>
    %c0_15 = arith.constant 0 : index
    %c0_16 = arith.constant 0 : index
    %20 = vector.load %arg7[%c0_15, %c0_16] : memref<1x256xf32, #tpu.memory_space<vmem>>, vector<1x256xf32>
    %21 = vector.broadcast %20 : vector<1x256xf32> to vector<8x256xf32>
    %22 = arith.addf %19, %21 : vector<8x256xf32>
    %cst_17 = arith.constant 0.000000e+00 : f32
    %23 = vector.broadcast %cst_17 : f32 to vector<8x256xf32>
    %24 = arith.maximumf %22, %23 : vector<8x256xf32>
    %c0_18 = arith.constant 0 : index
    %c0_19 = arith.constant 0 : index
    %25 = vector.load %arg8[%c0_18, %c0_19] : memref<256x256xbf16, #tpu.memory_space<vmem>>, vector<256x256xbf16>
    %26 = arith.extf %25 : vector<256x256xbf16> to vector<256x256xf32>
    %cst_20 = arith.constant dense<0.000000e+00> : vector<8x256xf32>
    %27 = tpu.matmul %24, %26, %cst_20 {dimension_numbers = #tpu.dot_dimension_numbers<[1], [0], [0], [1], [0, 0, 1, 1], [], []>} : vector<8x256xf32>, vector<256x256xf32>, vector<8x256xf32> -> vector<8x256xf32>
    %c0_21 = arith.constant 0 : index
    %c0_22 = arith.constant 0 : index
    %28 = vector.load %arg9[%c0_21, %c0_22] : memref<1x256xf32, #tpu.memory_space<vmem>>, vector<1x256xf32>
    %29 = vector.broadcast %28 : vector<1x256xf32> to vector<8x256xf32>
    %30 = arith.addf %27, %29 : vector<8x256xf32>
    %cst_23 = arith.constant 0.000000e+00 : f32
    %31 = vector.broadcast %cst_23 : f32 to vector<8x256xf32>
    %32 = arith.maximumf %30, %31 : vector<8x256xf32>
    %c0_24 = arith.constant 0 : index
    %c0_25 = arith.constant 0 : index
    %33 = vector.load %arg10[%c0_24, %c0_25] : memref<256x256xbf16, #tpu.memory_space<vmem>>, vector<256x256xbf16>
    %34 = arith.extf %33 : vector<256x256xbf16> to vector<256x256xf32>
    %cst_26 = arith.constant dense<0.000000e+00> : vector<8x256xf32>
    %35 = tpu.matmul %32, %34, %cst_26 {dimension_numbers = #tpu.dot_dimension_numbers<[1], [0], [0], [1], [0, 0, 1, 1], [], []>} : vector<8x256xf32>, vector<256x256xf32>, vector<8x256xf32> -> vector<8x256xf32>
    %c0_27 = arith.constant 0 : index
    %c0_28 = arith.constant 0 : index
    %36 = vector.load %arg11[%c0_27, %c0_28] : memref<1x256xf32, #tpu.memory_space<vmem>>, vector<1x256xf32>
    %37 = vector.broadcast %36 : vector<1x256xf32> to vector<8x256xf32>
    %38 = arith.addf %35, %37 : vector<8x256xf32>
    %cst_29 = arith.constant dense<0xFF800000> : vector<8xf32>
    %39 = vector.multi_reduction <maximumf>, %38, %cst_29 [1] : vector<8x256xf32> to vector<8xf32>
    %40 = vector.shape_cast %39 : vector<8xf32> to vector<8x1xf32>
    %41 = vector.broadcast %40 : vector<8x1xf32> to vector<8x256xf32>
    %42 = arith.subf %38, %41 : vector<8x256xf32>
    %43 = math.exp %42 : vector<8x256xf32>
    %cst_30 = arith.constant dense<0.000000e+00> : vector<8xf32>
    %44 = vector.multi_reduction <add>, %43, %cst_30 [1] : vector<8x256xf32> to vector<8xf32>
    %45 = vector.shape_cast %44 : vector<8xf32> to vector<8x1xf32>
    %c0_31 = arith.constant 0 : index
    %c0_32 = arith.constant 0 : index
    %46 = vector.load %arg12[%c0_31, %c0_32] : memref<256x128xbf16, #tpu.memory_space<vmem>>, vector<256x128xbf16>
    %47 = arith.extf %46 : vector<256x128xbf16> to vector<256x128xf32>
    %cst_33 = arith.constant dense<0.000000e+00> : vector<8x128xf32>
    %48 = tpu.matmul %43, %47, %cst_33 {dimension_numbers = #tpu.dot_dimension_numbers<[1], [0], [0], [1], [0, 0, 1, 1], [], []>} : vector<8x256xf32>, vector<256x128xf32>, vector<8x128xf32> -> vector<8x128xf32>
    %49 = tpu.reciprocal %45 {approx = true} : vector<8x1xf32> -> vector<8x1xf32>
    %50 = vector.broadcast %49 : vector<8x1xf32> to vector<8x128xf32>
    %51 = arith.mulf %48, %50 : vector<8x128xf32>
    %c0_34 = arith.constant 0 : index
    %c0_35 = arith.constant 0 : index
    %52 = vector.load %arg13[%c0_34, %c0_35] : memref<1x128xf32, #tpu.memory_space<vmem>>, vector<1x128xf32>
    %53 = vector.broadcast %52 : vector<1x128xf32> to vector<8x128xf32>
    %54 = arith.addf %51, %53 : vector<8x128xf32>
    %c0_36 = arith.constant 0 : index
    %c0_37 = arith.constant 0 : index
    %55 = vector.load %arg14[%c0_36, %c0_37] : memref<8x128xf32, #tpu.memory_space<vmem>>, vector<8x128xf32>
    tpu.vector_store %arg14[%c0_36, %c0_37], %54 {strides = array<i32>} : memref<8x128xf32, #tpu.memory_space<vmem>>, vector<8x128xf32>,
    return
  }
  func.func @transform_0(%arg0: i32) -> (i32, i32) {
    %c0_i32 = arith.constant 0 : i32
    %c0_i32_0 = arith.constant 0 : i32
    return %arg0, %c0_i32 : i32, i32
  }
  func.func @transform_1(%arg0: i32) -> (i32, i32) {
    %c0_i32 = arith.constant 0 : i32
    %c0_i32_0 = arith.constant 0 : i32
    %c0_i32_1 = arith.constant 0 : i32
    return %c0_i32, %c0_i32_0 : i32, i32
  }
  func.func @transform_2(%arg0: i32) -> (i32, i32) {
    %c0_i32 = arith.constant 0 : i32
    %c0_i32_0 = arith.constant 0 : i32
    %c0_i32_1 = arith.constant 0 : i32
    return %c0_i32, %c0_i32_0 : i32, i32
  }
  func.func @transform_3(%arg0: i32) -> (i32, i32) {
    %c0_i32 = arith.constant 0 : i32
    %c0_i32_0 = arith.constant 0 : i32
    %c0_i32_1 = arith.constant 0 : i32
    return %c0_i32, %c0_i32_0 : i32, i32
  }
  func.func @transform_4(%arg0: i32) -> (i32, i32) {
    %c0_i32 = arith.constant 0 : i32
    %c0_i32_0 = arith.constant 0 : i32
    %c0_i32_1 = arith.constant 0 : i32
    return %c0_i32, %c0_i32_0 : i32, i32
  }
  func.func @transform_5(%arg0: i32) -> (i32, i32) {
    %c0_i32 = arith.constant 0 : i32
    %c0_i32_0 = arith.constant 0 : i32
    %c0_i32_1 = arith.constant 0 : i32
    return %c0_i32, %c0_i32_0 : i32, i32
  }
  func.func @transform_6(%arg0: i32) -> (i32, i32) {
    %c0_i32 = arith.constant 0 : i32
    %c0_i32_0 = arith.constant 0 : i32
    %c0_i32_1 = arith.constant 0 : i32
    return %c0_i32, %c0_i32_0 : i32, i32
  }
  func.func @transform_7(%arg0: i32) -> (i32, i32) {
    %c0_i32 = arith.constant 0 : i32
    %c0_i32_0 = arith.constant 0 : i32
    %c0_i32_1 = arith.constant 0 : i32
    return %c0_i32, %c0_i32_0 : i32, i32
  }
  func.func @transform_8(%arg0: i32) -> (i32, i32) {
    %c0_i32 = arith.constant 0 : i32
    %c0_i32_0 = arith.constant 0 : i32
    %c0_i32_1 = arith.constant 0 : i32
    return %c0_i32, %c0_i32_0 : i32, i32
  }
  func.func @transform_9(%arg0: i32) -> (i32, i32) {
    %c0_i32 = arith.constant 0 : i32
    %c0_i32_0 = arith.constant 0 : i32
    %c0_i32_1 = arith.constant 0 : i32
    return %c0_i32, %c0_i32_0 : i32, i32
  }
  func.func @transform_10(%arg0: i32) -> (i32, i32) {
    %c0_i32 = arith.constant 0 : i32
    %c0_i32_0 = arith.constant 0 : i32
    %c0_i32_1 = arith.constant 0 : i32
    return %c0_i32, %c0_i32_0 : i32, i32
  }
  func.func @transform_11(%arg0: i32) -> (i32, i32) {
    %c0_i32 = arith.constant 0 : i32
    %c0_i32_0 = arith.constant 0 : i32
    %c0_i32_1 = arith.constant 0 : i32
    return %c0_i32, %c0_i32_0 : i32, i32
  }
  func.func @transform_12(%arg0: i32) -> (i32, i32) {
    %c0_i32 = arith.constant 0 : i32
    %c0_i32_0 = arith.constant 0 : i32
    %c0_i32_1 = arith.constant 0 : i32
    return %c0_i32, %c0_i32_0 : i32, i32
  }
  func.func @transform_13(%arg0: i32) -> (i32, i32) {
    %c0_i32 = arith.constant 0 : i32
    %c0_i32_0 = arith.constant 0 : i32
    return %arg0, %c0_i32 : i32, i32
  }
}

</mosaic_0001>

<bundles_post_ra>
// kernel: tpu_custom_call.1
= control target key start
LH: loop header
LB: loop body
LE: loop exit
PB: predicated region body
PF: predicated region fallthrough
CT: control target
= control target key end

     0   :  { %18 = vsyncpa [#allocation3], 0  ;;  %s2208_s0 = inlined_call_operand.vmem [shape: f32[8,4], index: 0, kind: input, shape index: {}]   ;;  %s2209_s1 = inlined_call_operand.vmem [shape: bf16[4,256], index: 1, kind: input, shape index: {}]   ;;  %s2210_s2 = inlined_call_operand.vmem [shape: f32[1,256], index: 2, kind: input, shape index: {}]   ;;  %s2211_s3 = inlined_call_operand.hbm [shape: bf16[256,256], index: 3, kind: input, shape index: {}]   ;;  %s2212_s4 = inlined_call_operand.vmem [shape: f32[1,256], index: 4, kind: input, shape index: {}]   ;;  %s2213_s5 = inlined_call_operand.hbm [shape: bf16[256,256], index: 5, kind: input, shape index: {}]   ;;  %s2214_s6 = inlined_call_operand.vmem [shape: f32[1,256], index: 6, kind: input, shape index: {}]   ;;  %s2215_s7 = inlined_call_operand.hbm [shape: bf16[256,256], index: 7, kind: input, shape index: {}]   ;;  %s2216_s8 = inlined_call_operand.vmem [shape: f32[1,256], index: 8, kind: input, shape index: {}]   ;;  %s2217_s9 = inlined_call_operand.hbm [shape: bf16[256,256], index: 9, kind: input, shape index: {}]   ;;  %s2218_s10 = inlined_call_operand.vmem [shape: f32[1,256], index: 10, kind: input, shape index: {}]   ;;  %s2219_s11 = inlined_call_operand.hbm [shape: bf16[256,128], index: 11, kind: input, shape index: {}]   ;;  %s2220_s12 = inlined_call_operand.vmem [shape: f32[1,128], index: 12, kind: input, shape index: {}]   ;;  %s2221_s13 = inlined_call_operand.hbm [shape: f32[8,128], index: 13, kind: output, shape index: {}]  }
   0x1   :  { %19 = vsyncpa [#allocation6], 0 }
   0x2   :  { %20 = vsyncpa [#allocation9], 0 }
   0x3   :  { %21 = vsyncpa [#allocation4], 0  ;;  %s1991_s25 = smov [#allocation5]   ;;  %s1992_s27 = smov [#allocation8]  }
   0x4   :  { %s47_s26 = sshll.u32 %s1991_s25, 4  ;;  %s75_s28 = sshll.u32 %s1992_s27, 4  ;;  %s48_s26 = int_to_ptr.vmem [resolvable:$true] %s47_s26  ;;  %s2072_s28 = int_to_ptr.vmem [resolvable:$true] %s75_s28 }
   0x5   :  { %s1851_s14 = scalar_lea.hbm %s2213_s5, 4096 }
   0x6   :  { %p1852_p0 = scmp.ne.s32.totalorder %s2213_s5, %s1851_s14  ;;  %p1855_p1 = scmp.lt.u32.totalorder %s1851_s14, %s2213_s5 }
   0x8   :  { %p1857_p2 = pnand %p1855_p1, %p1852_p0 }
   0xa   :  { %1860 = shalt.err (!%p1857_p2)
}
   0xb   :  { %s1861_s19 = scalar_lea.vmem %s48_s26, 4096  ;;  %p1866_p4 = scmp.lt.s32.totalorder %s48_s26, %s48_s26 }
   0xc   :  { %p1862_p3 = scmp.ne.s32.totalorder %s48_s26, %s1861_s19  ;;  %p1867_p5 = scmp.lt.s32.totalorder %s1861_s19, %s1861_s19 }
   0xe   :  { %p1868_p6 = por %p1867_p5, %p1866_p4 }
  0x10   :  { %p1869_p7 = pnand %p1868_p6, %p1862_p3 }
  0x12   :  { %1872 = shalt.err (!%p1869_p7)
}
  0x13   :  { %s1993_s20 = smov 128   ;;  %s1994_s21 = smov 8  }
  0x14   :  { %53 = dma.hbm_to_vmem [thread:$0]  %s2213_s5, 4096, %s48_s26, [#allocation6], %s1993_s20, %s1993_s20, %s1994_s21  }
  0x15   :  { %s1873_s27 = scalar_lea.hbm %s2217_s9, 4096 }
  0x16   :  { %p1874_p8 = scmp.ne.s32.totalorder %s2217_s9, %s1873_s27  ;;  %p1877_p9 = scmp.lt.u32.totalorder %s1873_s27, %s2217_s9 }
  0x18   :  { %p1879_p10 = pnand %p1877_p9, %p1874_p8 }
  0x1a   :  { %1882 = shalt.err (!%p1879_p10)
}
  0x1b   :  { %s1883_s16 = scalar_lea.vmem %s2072_s28, 4096  ;;  %p1888_p12 = scmp.lt.s32.totalorder %s2072_s28, %s2072_s28 }
  0x1c   :  { %p1884_p11 = scmp.ne.s32.totalorder %s2072_s28, %s1883_s16  ;;  %p1889_p13 = scmp.lt.s32.totalorder %s1883_s16, %s1883_s16 }
  0x1e   :  { %p1890_p0 = por %p1889_p13, %p1888_p12 }
  0x20   :  { %p1891_p1 = pnand %p1890_p0, %p1884_p11 }
  0x22   :  { %1894 = shalt.err (!%p1891_p1)
}
  0x23   :  { %81 = dma.hbm_to_vmem [thread:$0]  %s2217_s9, 4096, %s2072_s28, [#allocation9], %s1993_s20, %s1993_s20, %s1994_s21  }
  0x24   :  { %s1995_s17 = smov [#allocation2]   ;;  %s1996_s19 = smov [#allocation7]  }
  0x25   :  { %s33_s18 = sshll.u32 %s1995_s17, 4  ;;  %s61_s22 = sshll.u32 %s1996_s19, 4  ;;  %s34_s18 = int_to_ptr.vmem [resolvable:$true] %s33_s18  ;;  %s2109_s22 = int_to_ptr.vmem [resolvable:$true] %s61_s22 }
  0x26   :  { %s1895_s25 = scalar_lea.hbm %s2211_s3, 4096 }
  0x27   :  { %p1896_p2 = scmp.ne.s32.totalorder %s2211_s3, %s1895_s25  ;;  %p1899_p3 = scmp.lt.u32.totalorder %s1895_s25, %s2211_s3 }
  0x29   :  { %p1901_p4 = pnand %p1899_p3, %p1896_p2 }
  0x2b   :  { %1904 = shalt.err (!%p1901_p4)
}
  0x2c   :  { %s1905_s9 = scalar_lea.vmem %s34_s18, 4096  ;;  %p1910_p6 = scmp.lt.s32.totalorder %s34_s18, %s34_s18 }
  0x2d   :  { %p1906_p5 = scmp.ne.s32.totalorder %s34_s18, %s1905_s9  ;;  %p1911_p7 = scmp.lt.s32.totalorder %s1905_s9, %s1905_s9 }
  0x2f   :  { %p1912_p8 = por %p1911_p7, %p1910_p6 }
  0x31   :  { %p1913_p9 = pnand %p1912_p8, %p1906_p5 }
  0x33   :  { %1916 = shalt.err (!%p1913_p9)
}
  0x34   :  { %39 = dma.hbm_to_vmem [thread:$0]  %s2211_s3, 4096, %s34_s18, [#allocation3], %s1993_s20, %s1993_s20, %s1994_s21  }
  0x35   :  { %s1917_s26 = scalar_lea.hbm %s2215_s7, 4096 }
  0x36   :  { %p1918_p10 = scmp.ne.s32.totalorder %s2215_s7, %s1917_s26  ;;  %p1921_p11 = scmp.lt.u32.totalorder %s1917_s26, %s2215_s7 }
  0x38   :  { %p1923_p12 = pnand %p1921_p11, %p1918_p10 }
  0x3a   :  { %1926 = shalt.err (!%p1923_p12)
}
  0x3b   :  { %s1927_s25 = scalar_lea.vmem %s2109_s22, 4096  ;;  %p1932_p0 = scmp.lt.s32.totalorder %s2109_s22, %s2109_s22 }
  0x3c   :  { %p1928_p13 = scmp.ne.s32.totalorder %s2109_s22, %s1927_s25  ;;  %p1933_p1 = scmp.lt.s32.totalorder %s1927_s25, %s1927_s25 }
  0x3e   :  { %p1934_p2 = por %p1933_p1, %p1932_p0 }
  0x40   :  { %p1935_p3 = pnand %p1934_p2, %p1928_p13 }
  0x42   :  { %1938 = shalt.err (!%p1935_p3)
}
  0x43   :  { %67 = dma.hbm_to_vmem [thread:$0]  %s2215_s7, 4096, %s2109_s22, [#allocation6], %s1993_s20, %s1993_s20, %s1994_s21  }
  0x44   :  { %s1997_s27 = smov [#allocation10]   ;;  %s1939_s9 = scalar_lea.hbm %s2219_s11, 2048 }
  0x45   :  { %s89_s29 = sshll.u32 %s1997_s27, 4  ;;  %p1940_p4 = scmp.ne.s32.totalorder %s2219_s11, %s1939_s9  ;;  %s90_s29 = int_to_ptr.vmem [resolvable:$true] %s89_s29 }
  0x46   :  { %p1943_p5 = scmp.lt.u32.totalorder %s1939_s9, %s2219_s11 }
  0x48   :  { %p1945_p6 = pnand %p1943_p5, %p1940_p4 }
  0x4a   :  { %1948 = shalt.err (!%p1945_p6)
}
  0x4b   :  { %s1949_s26 = scalar_lea.vmem %s90_s29, 2048  ;;  %p1954_p8 = scmp.lt.s32.totalorder %s90_s29, %s90_s29 }
  0x4c   :  { %p1950_p7 = scmp.ne.s32.totalorder %s90_s29, %s1949_s26  ;;  %p1955_p9 = scmp.lt.s32.totalorder %s1949_s26, %s1949_s26 }
  0x4e   :  { %p1956_p10 = por %p1955_p9, %p1954_p8 }
  0x50   :  { %p1957_p11 = pnand %p1956_p10, %p1950_p7 }
  0x52   :  { %1960 = shalt.err (!%p1957_p11)
}
  0x53   :  { %s1998_s7 = smov 64   ;;  %s1999_s20 = smov 4  }
  0x54   :  { %95 = dma.hbm_to_vmem [thread:$0]  %s2219_s11, 2048, %s90_s29, [#allocation9], %s1998_s7, %s1998_s7, %s1999_s20  }
  0x55   :  { %1983 = dma.done.wait [#allocation3], 4096  }
  0x56   :  { %1984 = vsyncadd [#allocation3], 4294963200 }
  0x57   :  { %1985 = dma.done.wait [#allocation6], 8192  }
  0x58   :  { %1986 = vsyncadd [#allocation6], 4294959104 }
  0x59   :  { %1987 = dma.done.wait [#allocation9], 6144  }
  0x5a   :  { %1988 = vsyncadd [#allocation9], 4294961152  ;;  %v2000_v0 = vmov 0.0   ;;  %v114_v1 = vld [vmem:[%s2209_s1] sm:$0xf]  ;;  %vm134_vm0 = vcmask 1043456  }
  0x5b   :  { %203 = vmatprep.mubr.f32.mxu0 %v2000_v0  ;;  %v115_v2 = vunpack.c.l.bf16 %v114_v1  ;;  %v1653_v3 = vld [vmem:[#allocation2 + $0x4] ss:$8 sps:$4 sm:$0xff]   ;;  %v1655_v4 = vld [vmem:[#allocation2] ss:$8 sps:$4 sm:$0xff]   ;;  %v1656_v5 = vld [vmem:[#allocation2 + $0x14] ss:$8 sps:$4 sm:$0xff]  }
  0x5c   :  { %1227 = vmatprep.subr.bf16.mxu1 %v1653_v3  ;;  %v113_v7 = vld [vmem:[%s2208_s0] sm:$0xff]  ;;  %vm130_vm1 = vcmask 31744   ;;  %v1658_v8 = vld [vmem:[#allocation2 + $0x10] ss:$8 sps:$4 sm:$0xff]   ;;  %v1662_v11 = vld [vmem:[#allocation2 + $0x34] ss:$8 sps:$4 sm:$0xff]   ;;  %v118_v3 = vlaneseq }
  0x5d   :  { %v129_v6 = vcombine.high %v115_v2, %v115_v2  ;;  %1229 = vmatpush1.bf16.msra.mxu1 %v1655_v4  ;;  %v1659_v9 = vld [vmem:[#allocation2 + $0x24] ss:$8 sps:$4 sm:$0xff]   ;;  %v1661_v10 = vld [vmem:[#allocation2 + $0x20] ss:$8 sps:$4 sm:$0xff]   ;;  %v1664_v12 = vld [vmem:[#allocation2 + $0x30] ss:$8 sps:$4 sm:$0xff]  }
  0x5e   :  { %1231 = vmatprep.subr.bf16.mxu1 %v1656_v5  ;;  %v1665_v13 = vld [vmem:[#allocation2 + $0x44] ss:$8 sps:$4 sm:$0xff]   ;;  %v1667_v14 = vld [vmem:[#allocation2 + $0x40] ss:$8 sps:$4 sm:$0xff]   ;;  %v1668_v15 = vld [vmem:[#allocation2 + $0x54] ss:$8 sps:$4 sm:$0xff]  }
  0x5f   :  { %1108 = vmatprep.subr.msk.mxu0 %vm134_vm0, %v129_v6  ;;  %v1670_v16 = vld [vmem:[#allocation2 + $0x50] ss:$8 sps:$4 sm:$0xff]   ;;  %v1671_v17 = vld [vmem:[#allocation2 + $0x64] ss:$8 sps:$4 sm:$0xff]   ;;  %v1673_v18 = vld [vmem:[#allocation2 + $0x60] ss:$8 sps:$4 sm:$0xff]  }
  0x60   :  { %1109 = vmatpush1.msk.msra.mxu0 %vm134_vm0, %v115_v2  ;;  %v1674_v19 = vld [vmem:[#allocation2 + $0x74] ss:$8 sps:$4 sm:$0xff]   ;;  %v1676_v20 = vld [vmem:[#allocation2 + $0x70] ss:$8 sps:$4 sm:$0xff]   ;;  %v1677_v21 = vld [vmem:[#allocation2 + $0x84] ss:$8 sps:$4 sm:$0xff]  }
  0x61   :  { %1110 = vmatmul.mubr.msk.f32.vlgmr.msra.gmra.mrb[0].mxu0 %vm130_vm1, %v113_v7  ;;  %1233 = vmatpush1.bf16.msra.mxu1 %v1658_v8  ;;  %v1679_v22 = vld [vmem:[#allocation2 + $0x80] ss:$8 sps:$4 sm:$0xff]   ;;  %v1680_v23 = vld [vmem:[#allocation2 + $0x94] ss:$8 sps:$4 sm:$0xff]   ;;  %v1682_v24 = vld [vmem:[#allocation2 + $0x90] ss:$8 sps:$4 sm:$0xff]  }
  0x62   :  { %1235 = vmatprep.subr.bf16.mxu1 %v1659_v9  ;;  %v1683_v25 = vld [vmem:[#allocation2 + $0xa4] ss:$8 sps:$4 sm:$0xff]   ;;  %v1685_v26 = vld [vmem:[#allocation2 + $0xa0] ss:$8 sps:$4 sm:$0xff]   ;;  %v1686_v27 = vld [vmem:[#allocation2 + $0xb4] ss:$8 sps:$4 sm:$0xff]  }
  0x63   :  { %v1688_v28 = vld [vmem:[#allocation2 + $0xb0] ss:$8 sps:$4 sm:$0xff]   ;;  %v1689_v29 = vld [vmem:[#allocation2 + $0xc4] ss:$8 sps:$4 sm:$0xff]   ;;  %v1691_v30 = vld [vmem:[#allocation2 + $0xc0] ss:$8 sps:$4 sm:$0xff]  }
  0x64   :  { %v1692_v31 = vld [vmem:[#allocation2 + $0xd4] ss:$8 sps:$4 sm:$0xff]   ;;  %v1694_v32 = vld [vmem:[#allocation2 + $0xd0] ss:$8 sps:$4 sm:$0xff]   ;;  %v1695_v33 = vld [vmem:[#allocation2 + $0xe4] ss:$8 sps:$4 sm:$0xff]  }
  0x65   :  { %1237 = vmatpush1.bf16.msra.mxu1 %v1661_v10  ;;  %v1697_v34 = vld [vmem:[#allocation2 + $0xe0] ss:$8 sps:$4 sm:$0xff]   ;;  %v1698_v35 = vld [vmem:[#allocation2 + $0xf4] ss:$8 sps:$4 sm:$0xff]   ;;  %v1700_v36 = vld [vmem:[#allocation2 + $0xf0] ss:$8 sps:$4 sm:$0xff]  }
  0x66   :  { %1239 = vmatprep.subr.bf16.mxu1 %v1662_v11  ;;  %v1701_v37 = vld [vmem:[#allocation5 + $0x4] ss:$8 sps:$4 sm:$0xff]   ;;  %v1703_v38 = vld [vmem:[#allocation5] ss:$8 sps:$4 sm:$0xff]   ;;  %v1704_v39 = vld [vmem:[#allocation5 + $0x14] ss:$8 sps:$4 sm:$0xff]  }
  0x67   :  { %1291 = vmatprep.subr.bf16.mxu0 %v1701_v37  ;;  %v1706_v40 = vld [vmem:[#allocation5 + $0x10] ss:$8 sps:$4 sm:$0xff]   ;;  %v1707_v41 = vld [vmem:[#allocation5 + $0x24] ss:$8 sps:$4 sm:$0xff]   ;;  %v1709_v42 = vld [vmem:[#allocation5 + $0x20] ss:$8 sps:$4 sm:$0xff]  }
  0x68   :  { %1293 = vmatpush1.bf16.msra.mxu0 %v1703_v38  ;;  %v1710_v43 = vld [vmem:[#allocation5 + $0x34] ss:$8 sps:$4 sm:$0xff]   ;;  %v1712_v44 = vld [vmem:[#allocation5 + $0x30] ss:$8 sps:$4 sm:$0xff]   ;;  %v1713_v45 = vld [vmem:[#allocation5 + $0x44] ss:$8 sps:$4 sm:$0xff]  }
  0x69   :  { %1241 = vmatpush1.bf16.msra.mxu1 %v1664_v12  ;;  %1295 = vmatprep.subr.bf16.mxu0 %v1704_v39  ;;  %v1715_v46 = vld [vmem:[#allocation5 + $0x40] ss:$8 sps:$4 sm:$0xff]   ;;  %v1716_v47 = vld [vmem:[#allocation5 + $0x54] ss:$8 sps:$4 sm:$0xff]   ;;  %v1718_v48 = vld [vmem:[#allocation5 + $0x50] ss:$8 sps:$4 sm:$0xff]  }
  0x6a   :  { %1243 = vmatprep.subr.bf16.mxu1 %v1665_v13  ;;  %v1719_v49 = vld [vmem:[#allocation5 + $0x64] ss:$8 sps:$4 sm:$0xff]   ;;  %v1721_v50 = vld [vmem:[#allocation5 + $0x60] ss:$8 sps:$4 sm:$0xff]   ;;  %v1722_v51 = vld [vmem:[#allocation5 + $0x74] ss:$8 sps:$4 sm:$0xff]  }
  0x6b   :  { %v1724_v52 = vld [vmem:[#allocation5 + $0x70] ss:$8 sps:$4 sm:$0xff]   ;;  %v1725_v53 = vld [vmem:[#allocation5 + $0x84] ss:$8 sps:$4 sm:$0xff]   ;;  %v1727_v54 = vld [vmem:[#allocation5 + $0x80] ss:$8 sps:$4 sm:$0xff]  }
  0x6c   :  { %1297 = vmatpush1.bf16.msra.mxu0 %v1706_v40  ;;  %v1728_v55 = vld [vmem:[#allocation5 + $0x94] ss:$8 sps:$4 sm:$0xff]   ;;  %v1730_v56 = vld [vmem:[#allocation5 + $0x90] ss:$8 sps:$4 sm:$0xff]   ;;  %v1731_v57 = vld [vmem:[#allocation5 + $0xa4] ss:$8 sps:$4 sm:$0xff]  }
  0x6d   :  { %1245 = vmatpush1.bf16.msra.mxu1 %v1667_v14  ;;  %1299 = vmatprep.subr.bf16.mxu0 %v1707_v41  ;;  %v1733_v58 = vld [vmem:[#allocation5 + $0xa0] ss:$8 sps:$4 sm:$0xff]   ;;  %v1734_v59 = vld [vmem:[#allocation5 + $0xb4] ss:$8 sps:$4 sm:$0xff]   ;;  %v1736_v60 = vld [vmem:[#allocation5 + $0xb0] ss:$8 sps:$4 sm:$0xff]  }
  0x6e   :  { %1247 = vmatprep.subr.bf16.mxu1 %v1668_v15  ;;  %v1737_v61 = vld [vmem:[#allocation5 + $0xc4] ss:$8 sps:$4 sm:$0xff]   ;;  %v1739_v62 = vld [vmem:[#allocation5 + $0xc0] ss:$8 sps:$4 sm:$0xff]   ;;  %v1740_v63 = vld [vmem:[#allocation5 + $0xd4] ss:$8 sps:$4 sm:$0xff]  }
  0x6f   :  { %v1742_v0 = vld [vmem:[#allocation5 + $0xd0] ss:$8 sps:$4 sm:$0xff]   ;;  %v1743_v1 = vld [vmem:[#allocation5 + $0xe4] ss:$8 sps:$4 sm:$0xff]   ;;  %v1745_v2 = vld [vmem:[#allocation5 + $0xe0] ss:$8 sps:$4 sm:$0xff]  }
  0x70   :  { %1301 = vmatpush1.bf16.msra.mxu0 %v1709_v42  ;;  %v119_v4 = vshrl.u32 %v118_v3, 7  ;;  %v116_v6 = vld [vmem:[%s2210_s2] sm:$0x3]  ;;  %v1778_v37 = vld [vmem:[#allocation7 + $0x90] ss:$8 sps:$4 sm:$0xff]   ;;  %s2001_s29 = smov [#allocation11]  }
  0x71   :  { %1249 = vmatpush1.bf16.msra.mxu1 %v1670_v16  ;;  %1303 = vmatprep.subr.bf16.mxu0 %v1710_v43  ;;  %v1746_v16 = vld [vmem:[#allocation5 + $0xf4] ss:$8 sps:$4 sm:$0xff]   ;;  %v1779_v38 = vld [vmem:[#allocation7 + $0xa4] ss:$8 sps:$4 sm:$0xff]   ;;  %v1781_v39 = vld [vmem:[#allocation7 + $0xa0] ss:$8 sps:$4 sm:$0xff]  }
  0x72   :  { %1251 = vmatprep.subr.bf16.mxu1 %v1671_v17  ;;  %v2164_v5 = vsub.s32 0, %v119_v4  ;;  %v2169_v7 = vsub.s32 1, %v119_v4  ;;  %v1748_v17 = vld [vmem:[#allocation5 + $0xf0] ss:$8 sps:$4 sm:$0xff]   ;;  %v1782_v40 = vld [vmem:[#allocation7 + $0xb4] ss:$8 sps:$4 sm:$0xff]  }
  0x73   :  { %v1784_v41 = vld [vmem:[#allocation7 + $0xb0] ss:$8 sps:$4 sm:$0xff]   ;;  %v1785_v42 = vld [vmem:[#allocation7 + $0xc4] ss:$8 sps:$4 sm:$0xff]   ;;  %v1787_v43 = vld [vmem:[#allocation7 + $0xc0] ss:$8 sps:$4 sm:$0xff]  }
  0x74   :  { %1305 = vmatpush1.bf16.msra.mxu0 %v1712_v44  ;;  %v121_v8 = vrot.slane %v116_v6, %v2164_v5  ;;  %v125_v9 = vrot.slane %v116_v6, %v2169_v7  ;;  %v1788_v44 = vld [vmem:[#allocation7 + $0xd4] ss:$8 sps:$4 sm:$0xff]   ;;  %v1809_v3 = vld [vmem:[#allocation8 + $0x44] ss:$8 sps:$4 sm:$0xff]   ;;  %v1811_v4 = vld [vmem:[#allocation8 + $0x40] ss:$8 sps:$4 sm:$0xff]  }
  0x75   :  { %1253 = vmatpush1.bf16.msra.mxu1 %v1673_v18  ;;  %1307 = vmatprep.subr.bf16.mxu0 %v1713_v45  ;;  %v1749_v18 = vld [vmem:[#allocation7 + $0x4] ss:$8 sps:$4 sm:$0xff]   ;;  %v1790_v45 = vld [vmem:[#allocation7 + $0xd0] ss:$8 sps:$4 sm:$0xff]   ;;  %v1812_v6 = vld [vmem:[#allocation8 + $0x54] ss:$8 sps:$4 sm:$0xff]  }
  0x76   :  { %1255 = vmatprep.subr.bf16.mxu1 %v1674_v19  ;;  %v1751_v19 = vld [vmem:[#allocation7] ss:$8 sps:$4 sm:$0xff]   ;;  %s1097_s30 = sshll.u32 %s2001_s29, 4  ;;  %s1098_s30 = int_to_ptr.vmem [resolvable:$true] %s1097_s30 }
  0x77   :  { %s1961_s14 = scalar_lea.vmem %s1098_s30, 128  ;;  %p1966_p13 = scmp.lt.s32.totalorder %s1098_s30, %s1098_s30 }
  0x78   :  { %1309 = vmatpush1.bf16.msra.mxu0 %v1715_v46  ;;  %v1791_v46 = vld [vmem:[#allocation7 + $0xe4] ss:$8 sps:$4 sm:$0xff]   ;;  %p1962_p12 = scmp.ne.s32.totalorder %s1098_s30, %s1961_s14  ;;  %p1967_p0 = scmp.lt.s32.totalorder %s1961_s14, %s1961_s14 }
  0x79   :  { %1257 = vmatpush1.bf16.msra.mxu1 %v1676_v20  ;;  %1311 = vmatprep.subr.bf16.mxu0 %v1716_v47  ;;  %v1752_v20 = vld [vmem:[#allocation7 + $0x14] ss:$8 sps:$4 sm:$0xff]   ;;  %v1793_v47 = vld [vmem:[#allocation7 + $0xe0] ss:$8 sps:$4 sm:$0xff]  }
  0x7a   :  { %1259 = vmatprep.subr.bf16.mxu1 %v1677_v21  ;;  %v1754_v21 = vld [vmem:[#allocation7 + $0x10] ss:$8 sps:$4 sm:$0xff]   ;;  %p1968_p1 = por %p1967_p0, %p1966_p13 }
  0x7c   :  { %1313 = vmatpush1.bf16.msra.mxu0 %v1718_v48  ;;  %v308_v48 = vld [vmem:[%s2212_s4] sm:$0x3]  ;;  %p1969_p2 = pnand %p1968_p1, %p1962_p12 }
  0x7d   :  { %1261 = vmatpush1.bf16.msra.mxu1 %v1679_v22  ;;  %1315 = vmatprep.subr.bf16.mxu0 %v1719_v49  ;;  %v1755_v22 = vld [vmem:[#allocation7 + $0x24] ss:$8 sps:$4 sm:$0xff]   ;;  %v313_v49 = vrot.slane %v308_v48, %v2164_v5 }
  0x7e   :  { %1263 = vmatprep.subr.bf16.mxu1 %v1680_v23  ;;  %v1757_v23 = vld [vmem:[#allocation7 + $0x20] ss:$8 sps:$4 sm:$0xff]  }
  0x80   :  { %1317 = vmatpush1.bf16.msra.mxu0 %v1721_v50  ;;  %v317_v50 = vrot.slane %v308_v48, %v2169_v7  ;;  %v1113_v48 = vld [vmem:[#allocation10] sm:$0xff]  }
  0x81   :  { %1265 = vmatpush1.bf16.msra.mxu1 %v1682_v24  ;;  %1319 = vmatprep.subr.bf16.mxu0 %v1722_v51  ;;  %v1758_v24 = vld [vmem:[#allocation7 + $0x34] ss:$8 sps:$4 sm:$0xff]  }
  0x82   :  { %1267 = vmatprep.subr.bf16.mxu1 %v1683_v25  ;;  %v1760_v25 = vld [vmem:[#allocation7 + $0x30] ss:$8 sps:$4 sm:$0xff]  }
  0x84   :  { %1321 = vmatpush1.bf16.msra.mxu0 %v1724_v52 }
  0x85   :  { %1269 = vmatpush1.bf16.msra.mxu1 %v1685_v26  ;;  %1323 = vmatprep.subr.bf16.mxu0 %v1725_v53  ;;  %v1761_v26 = vld [vmem:[#allocation7 + $0x44] ss:$8 sps:$4 sm:$0xff]  }
  0x86   :  { %1271 = vmatprep.subr.bf16.mxu1 %v1686_v27  ;;  %v1763_v27 = vld [vmem:[#allocation7 + $0x40] ss:$8 sps:$4 sm:$0xff]  }
  0x88   :  { %1325 = vmatpush1.bf16.msra.mxu0 %v1727_v54 }
  0x89   :  { %1273 = vmatpush1.bf16.msra.mxu1 %v1688_v28  ;;  %1327 = vmatprep.subr.bf16.mxu0 %v1728_v55  ;;  %v1764_v28 = vld [vmem:[#allocation7 + $0x54] ss:$8 sps:$4 sm:$0xff]  }
  0x8a   :  { %1275 = vmatprep.subr.bf16.mxu1 %v1689_v29  ;;  %v1766_v29 = vld [vmem:[#allocation7 + $0x50] ss:$8 sps:$4 sm:$0xff]  }
  0x8c   :  { %1329 = vmatpush1.bf16.msra.mxu0 %v1730_v56 }
  0x8d   :  { %1277 = vmatpush1.bf16.msra.mxu1 %v1691_v30  ;;  %1331 = vmatprep.subr.bf16.mxu0 %v1731_v57  ;;  %v1767_v30 = vld [vmem:[#allocation7 + $0x64] ss:$8 sps:$4 sm:$0xff]   ;;  %v1794_v57 = vld [vmem:[#allocation7 + $0xf4] ss:$8 sps:$4 sm:$0xff]  }
  0x8e   :  { %1279 = vmatprep.subr.bf16.mxu1 %v1692_v31  ;;  %v1769_v31 = vld [vmem:[#allocation7 + $0x60] ss:$8 sps:$4 sm:$0xff]  }
  0x90   :  { %1333 = vmatpush1.bf16.msra.mxu0 %v1733_v58  ;;  %v1796_v58 = vld [vmem:[#allocation7 + $0xf0] ss:$8 sps:$4 sm:$0xff]  }
  0x91   :  { %1281 = vmatpush1.bf16.msra.mxu1 %v1694_v32  ;;  %1335 = vmatprep.subr.bf16.mxu0 %v1734_v59  ;;  %v1770_v32 = vld [vmem:[#allocation7 + $0x74] ss:$8 sps:$4 sm:$0xff]   ;;  %v1797_v59 = vld [vmem:[#allocation8 + $0x4] ss:$8 sps:$4 sm:$0xff]  }
  0x92   :  { %1283 = vmatprep.subr.bf16.mxu1 %v1695_v33  ;;  %v1772_v33 = vld [vmem:[#allocation7 + $0x70] ss:$8 sps:$4 sm:$0xff]  }
  0x94   :  { %1337 = vmatpush1.bf16.msra.mxu0 %v1736_v60  ;;  %v1799_v60 = vld [vmem:[#allocation8] ss:$8 sps:$4 sm:$0xff]  }
  0x95   :  { %1285 = vmatpush1.bf16.msra.mxu1 %v1697_v34  ;;  %1339 = vmatprep.subr.bf16.mxu0 %v1737_v61  ;;  %v1773_v34 = vld [vmem:[#allocation7 + $0x84] ss:$8 sps:$4 sm:$0xff]   ;;  %v1800_v61 = vld [vmem:[#allocation8 + $0x14] ss:$8 sps:$4 sm:$0xff]  }
  0x96   :  { %1287 = vmatprep.subr.bf16.mxu1 %v1698_v35  ;;  %v1775_v35 = vld [vmem:[#allocation7 + $0x80] ss:$8 sps:$4 sm:$0xff]  }
  0x98   :  { %1341 = vmatpush1.bf16.msra.mxu0 %v1739_v62  ;;  %v1802_v62 = vld [vmem:[#allocation8 + $0x10] ss:$8 sps:$4 sm:$0xff]  }
  0x99   :  { %1289 = vmatpush1.bf16.msra.mxu1 %v1700_v36  ;;  %1343 = vmatprep.subr.bf16.mxu0 %v1740_v63  ;;  %v1776_v36 = vld [vmem:[#allocation7 + $0x94] ss:$8 sps:$4 sm:$0xff]   ;;  %v1803_v63 = vld [vmem:[#allocation8 + $0x24] ss:$8 sps:$4 sm:$0xff]  }
  0x9a   :  { %1355 = vmatprep.subr.bf16.mxu1 %v1749_v18  ;;  %v1829_v18 = vld [vmem:[#allocation8 + $0xa0] ss:$8 sps:$4 sm:$0xff]  }
  0x9c   :  { %1345 = vmatpush1.bf16.msra.mxu0 %v1742_v0  ;;  %v1805_v0 = vld [vmem:[#allocation8 + $0x20] ss:$8 sps:$4 sm:$0xff]  }
  0x9d   :  { %1347 = vmatprep.subr.bf16.mxu0 %v1743_v1  ;;  %v1806_v1 = vld [vmem:[#allocation8 + $0x34] ss:$8 sps:$4 sm:$0xff]  }
  0xa0   :  { %1349 = vmatpush1.bf16.msra.mxu0 %v1745_v2  ;;  %v1808_v2 = vld [vmem:[#allocation8 + $0x30] ss:$8 sps:$4 sm:$0xff]  }
  0xa1   :  { %1351 = vmatprep.subr.bf16.mxu0 %v1746_v16  ;;  %v1826_v16 = vld [vmem:[#allocation8 + $0x90] ss:$8 sps:$4 sm:$0xff]  }
  0xa4   :  { %1353 = vmatpush1.bf16.msra.mxu0 %v1748_v17  ;;  %v1827_v17 = vld [vmem:[#allocation8 + $0xa4] ss:$8 sps:$4 sm:$0xff]  }
  0xa5   :  { %1419 = vmatprep.subr.bf16.mxu0 %v1797_v59 }
 0x134   :  { %v205_v10 = vpop.f32.mrb[0].mxu0 }
 0x135   :  { %v206_v11 = vadd.f32 %v205_v10, %v121_v8  ;;  %v207_v12 = vpop.f32.mrb[1].mxu0  ;;  %v1814_v8 = vld [vmem:[#allocation8 + $0x50] ss:$8 sps:$4 sm:$0xff]   ;;  %v1817_v10 = vld [vmem:[#allocation8 + $0x60] ss:$8 sps:$4 sm:$0xff]  }
 0x136   :  { %v208_v13 = vadd.f32 %v207_v12, %v125_v9  ;;  %v1815_v9 = vld [vmem:[#allocation8 + $0x64] ss:$8 sps:$4 sm:$0xff]   ;;  %v1820_v12 = vld [vmem:[#allocation8 + $0x70] ss:$8 sps:$4 sm:$0xff]  }
 0x137   :  { %v210_v15 = vmax.f32 %v206_v11, 0.0  ;;  %v1818_v11 = vld [vmem:[#allocation8 + $0x74] ss:$8 sps:$4 sm:$0xff]  }
 0x138   :  { %v211_v14 = vmax.f32 %v208_v13, 0.0  ;;  %v1821_v13 = vld [vmem:[#allocation8 + $0x84] ss:$8 sps:$4 sm:$0xff]  }
 0x13a   :  { %384 = vmatprep.mubr.f32.mxu1 %v211_v14  ;;  %v1823_v14 = vld [vmem:[#allocation8 + $0x80] ss:$8 sps:$4 sm:$0xff]  }
 0x13b   :  { %385 = vmatmul.mubr.f32.vlgmr.msra.gmra.mrb[0].mxu1 %v210_v15  ;;  %v1824_v15 = vld [vmem:[#allocation8 + $0x94] ss:$8 sps:$4 sm:$0xff]  }
 0x13c   :  { %1357 = vmatpush1.bf16.msra.mxu1 %v1751_v19  ;;  %v1830_v19 = vld [vmem:[#allocation8 + $0xb4] ss:$8 sps:$4 sm:$0xff]  }
 0x13d   :  { %1359 = vmatprep.subr.bf16.mxu1 %v1752_v20  ;;  %v1832_v20 = vld [vmem:[#allocation8 + $0xb0] ss:$8 sps:$4 sm:$0xff]  }
 0x140   :  { %1361 = vmatpush1.bf16.msra.mxu1 %v1754_v21  ;;  %v1833_v21 = vld [vmem:[#allocation8 + $0xc4] ss:$8 sps:$4 sm:$0xff]  }
 0x141   :  { %1363 = vmatprep.subr.bf16.mxu1 %v1755_v22  ;;  %v1835_v22 = vld [vmem:[#allocation8 + $0xc0] ss:$8 sps:$4 sm:$0xff]  }
 0x144   :  { %1365 = vmatpush1.bf16.msra.mxu1 %v1757_v23  ;;  %v1836_v23 = vld [vmem:[#allocation8 + $0xd4] ss:$8 sps:$4 sm:$0xff]  }
 0x145   :  { %1367 = vmatprep.subr.bf16.mxu1 %v1758_v24  ;;  %v1838_v24 = vld [vmem:[#allocation8 + $0xd0] ss:$8 sps:$4 sm:$0xff]  }
 0x148   :  { %1369 = vmatpush1.bf16.msra.mxu1 %v1760_v25  ;;  %v1839_v25 = vld [vmem:[#allocation8 + $0xe4] ss:$8 sps:$4 sm:$0xff]  }
 0x149   :  { %1371 = vmatprep.subr.bf16.mxu1 %v1761_v26  ;;  %v1841_v26 = vld [vmem:[#allocation8 + $0xe0] ss:$8 sps:$4 sm:$0xff]  }
 0x14c   :  { %1373 = vmatpush1.bf16.msra.mxu1 %v1763_v27  ;;  %v489_v27 = vld [vmem:[%s2214_s6] sm:$0x3] }
 0x14d   :  { %1375 = vmatprep.subr.bf16.mxu1 %v1764_v28  ;;  %v494_v28 = vrot.slane %v489_v27, %v2164_v5 }
 0x150   :  { %1377 = vmatpush1.bf16.msra.mxu1 %v1766_v29  ;;  %v498_v29 = vrot.slane %v489_v27, %v2169_v7 }
 0x151   :  { %1379 = vmatprep.subr.bf16.mxu1 %v1767_v30 }
 0x154   :  { %1381 = vmatpush1.bf16.msra.mxu1 %v1769_v31 }
 0x155   :  { %1383 = vmatprep.subr.bf16.mxu1 %v1770_v32 }
 0x158   :  { %1385 = vmatpush1.bf16.msra.mxu1 %v1772_v33 }
 0x159   :  { %1387 = vmatprep.subr.bf16.mxu1 %v1773_v34 }
 0x15c   :  { %1389 = vmatpush1.bf16.msra.mxu1 %v1775_v35 }
 0x15d   :  { %1391 = vmatprep.subr.bf16.mxu1 %v1776_v36  ;;  %v1842_v36 = vld [vmem:[#allocation8 + $0xf4] ss:$8 sps:$4 sm:$0xff]  }
 0x160   :  { %1393 = vmatpush1.bf16.msra.mxu1 %v1778_v37  ;;  %v1844_v37 = vld [vmem:[#allocation8 + $0xf0] ss:$8 sps:$4 sm:$0xff]  }
 0x161   :  { %1395 = vmatprep.subr.bf16.mxu1 %v1779_v38  ;;  %v670_v38 = vld [vmem:[%s2216_s8] sm:$0x3] }
 0x164   :  { %1397 = vmatpush1.bf16.msra.mxu1 %v1781_v39  ;;  %v675_v39 = vrot.slane %v670_v38, %v2164_v5 }
 0x165   :  { %1399 = vmatprep.subr.bf16.mxu1 %v1782_v40  ;;  %v679_v40 = vrot.slane %v670_v38, %v2169_v7 }
 0x168   :  { %1401 = vmatpush1.bf16.msra.mxu1 %v1784_v41 }
 0x169   :  { %1403 = vmatprep.subr.bf16.mxu1 %v1785_v42 }
 0x16c   :  { %1405 = vmatpush1.bf16.msra.mxu1 %v1787_v43 }
 0x16d   :  { %1407 = vmatprep.subr.bf16.mxu1 %v1788_v44 }
 0x170   :  { %1409 = vmatpush1.bf16.msra.mxu1 %v1790_v45 }
 0x171   :  { %1411 = vmatprep.subr.bf16.mxu1 %v1791_v46 }
 0x174   :  { %1413 = vmatpush1.bf16.msra.mxu1 %v1793_v47  ;;  %v1183_v47 = vld [vmem:[#allocation10 + $0x40] sm:$0xff]  }
 0x175   :  { %1415 = vmatprep.subr.bf16.mxu1 %v1794_v57 }
 0x178   :  { %1417 = vmatpush1.bf16.msra.mxu1 %v1796_v58 }
 0x179   :  { %1483 = vmatprep.subr.bf16.mxu1 %v1183_v47 }
 0x20e   :  { %v386_v51 = vpop.f32.mrb[0].mxu1 }
 0x20f   :  { %v387_v52 = vadd.f32 %v386_v51, %v313_v49  ;;  %v388_v53 = vpop.f32.mrb[1].mxu1  ;;  %v1184_v49 = vld [vmem:[#allocation10 + $0x48] sm:$0xff]   ;;  %v1185_v51 = vld [vmem:[#allocation10 + $0x50] sm:$0xff]  }
 0x210   :  { %v389_v54 = vadd.f32 %v388_v53, %v317_v50  ;;  %v1176_v50 = vld [vmem:[#allocation10 + $0x8] sm:$0xff]   ;;  %v1186_v53 = vld [vmem:[#allocation10 + $0x58] sm:$0xff]  }
 0x211   :  { %v391_v56 = vmax.f32 %v387_v52, 0.0  ;;  %v1177_v52 = vld [vmem:[#allocation10 + $0x10] sm:$0xff]  }
 0x212   :  { %v392_v55 = vmax.f32 %v389_v54, 0.0  ;;  %v1178_v54 = vld [vmem:[#allocation10 + $0x18] sm:$0xff]  }
 0x214   :  { %565 = vmatprep.mubr.f32.mxu0 %v392_v55  ;;  %v851_v55 = vld [vmem:[%s2218_s10] sm:$0x3] }
 0x215   :  { %566 = vmatmul.mubr.f32.vlgmr.msra.gmra.mrb[2].mxu0 %v391_v56  ;;  %v856_v56 = vrot.slane %v851_v55, %v2164_v5  ;;  %v860_v57 = vrot.slane %v851_v55, %v2169_v7  ;;  %v1190_v5 = vld [vmem:[#allocation10 + $0x78] sm:$0xff]  }
 0x216   :  { %1421 = vmatpush1.bf16.msra.mxu0 %v1799_v60  ;;  %v1182_v7 = vld [vmem:[#allocation10 + $0x38] sm:$0xff]  }
 0x217   :  { %1423 = vmatprep.subr.bf16.mxu0 %v1800_v61 }
 0x21a   :  { %1425 = vmatpush1.bf16.msra.mxu0 %v1802_v62 }
 0x21b   :  { %1427 = vmatprep.subr.bf16.mxu0 %v1803_v63  ;;  %v1187_v63 = vld [vmem:[#allocation10 + $0x60] sm:$0xff]  }
 0x21e   :  { %1429 = vmatpush1.bf16.msra.mxu0 %v1805_v0  ;;  %v1179_v0 = vld [vmem:[#allocation10 + $0x20] sm:$0xff]  }
 0x21f   :  { %1431 = vmatprep.subr.bf16.mxu0 %v1806_v1  ;;  %v1188_v1 = vld [vmem:[#allocation10 + $0x68] sm:$0xff]  }
 0x222   :  { %1433 = vmatpush1.bf16.msra.mxu0 %v1808_v2  ;;  %v1180_v2 = vld [vmem:[#allocation10 + $0x28] sm:$0xff]  }
 0x223   :  { %1435 = vmatprep.subr.bf16.mxu0 %v1809_v3  ;;  %v1189_v3 = vld [vmem:[#allocation10 + $0x70] sm:$0xff]  }
 0x226   :  { %1437 = vmatpush1.bf16.msra.mxu0 %v1811_v4  ;;  %v1181_v4 = vld [vmem:[#allocation10 + $0x30] sm:$0xff]  }
 0x227   :  { %1439 = vmatprep.subr.bf16.mxu0 %v1812_v6 }
 0x22a   :  { %1441 = vmatpush1.bf16.msra.mxu0 %v1814_v8 }
 0x22b   :  { %1443 = vmatprep.subr.bf16.mxu0 %v1815_v9 }
 0x22e   :  { %1445 = vmatpush1.bf16.msra.mxu0 %v1817_v10 }
 0x22f   :  { %1447 = vmatprep.subr.bf16.mxu0 %v1818_v11 }
 0x232   :  { %1449 = vmatpush1.bf16.msra.mxu0 %v1820_v12 }
 0x233   :  { %1451 = vmatprep.subr.bf16.mxu0 %v1821_v13 }
 0x236   :  { %1453 = vmatpush1.bf16.msra.mxu0 %v1823_v14 }
 0x237   :  { %1455 = vmatprep.subr.bf16.mxu0 %v1824_v15 }
 0x23a   :  { %1457 = vmatpush1.bf16.msra.mxu0 %v1826_v16 }
 0x23b   :  { %1459 = vmatprep.subr.bf16.mxu0 %v1827_v17 }
 0x23e   :  { %1461 = vmatpush1.bf16.msra.mxu0 %v1829_v18 }
 0x23f   :  { %1463 = vmatprep.subr.bf16.mxu0 %v1830_v19 }
 0x242   :  { %1465 = vmatpush1.bf16.msra.mxu0 %v1832_v20  ;;  %v1111_v20 = vld [vmem:[%s2220_s12] ss:$0 sm:$0xff] }
 0x243   :  { %1467 = vmatprep.subr.bf16.mxu0 %v1833_v21 }
 0x246   :  { %1469 = vmatpush1.bf16.msra.mxu0 %v1835_v22 }
 0x247   :  { %1471 = vmatprep.subr.bf16.mxu0 %v1836_v23 }
 0x24a   :  { %1473 = vmatpush1.bf16.msra.mxu0 %v1838_v24 }
 0x24b   :  { %1475 = vmatprep.subr.bf16.mxu0 %v1839_v25 }
 0x24e   :  { %1477 = vmatpush1.bf16.msra.mxu0 %v1841_v26 }
 0x24f   :  { %1479 = vmatprep.subr.bf16.mxu0 %v1842_v36 }
 0x252   :  { %1481 = vmatpush1.bf16.msra.mxu0 %v1844_v37 }
 0x2e8   :  { %v567_v30 = vpop.f32.mrb[2].mxu0 }
 0x2e9   :  { %v568_v31 = vadd.f32 %v567_v30, %v494_v28  ;;  %v569_v32 = vpop.f32.mrb[3].mxu0 }
 0x2ea   :  { %v570_v33 = vadd.f32 %v569_v32, %v498_v29 }
 0x2eb   :  { %v572_v35 = vmax.f32 %v568_v31, 0.0 }
 0x2ec   :  { %v573_v34 = vmax.f32 %v570_v33, 0.0 }
 0x2ee   :  { %746 = vmatprep.mubr.f32.mxu1 %v573_v34 }
 0x2ef   :  { %747 = vmatmul.mubr.f32.vlgmr.msra.gmra.mrb[2].mxu1 %v572_v35 }
 0x2f0   :  { %1485 = vmatpush3.bf16.msra.mxu1 %v1113_v48 }
 0x2f1   :  { %1487 = vmatprep.subr.bf16.mxu1 %v1184_v49 }
 0x2f4   :  { %1489 = vmatpush3.bf16.msra.mxu1 %v1176_v50 }
 0x2f5   :  { %1491 = vmatprep.subr.bf16.mxu1 %v1185_v51 }
 0x2f8   :  { %1493 = vmatpush3.bf16.msra.mxu1 %v1177_v52 }
 0x2f9   :  { %1495 = vmatprep.subr.bf16.mxu1 %v1186_v53 }
 0x2fc   :  { %1497 = vmatpush3.bf16.msra.mxu1 %v1178_v54 }
 0x2fd   :  { %1499 = vmatprep.subr.bf16.mxu1 %v1187_v63 }
 0x300   :  { %1501 = vmatpush3.bf16.msra.mxu1 %v1179_v0 }
 0x301   :  { %1503 = vmatprep.subr.bf16.mxu1 %v1188_v1 }
 0x304   :  { %1505 = vmatpush3.bf16.msra.mxu1 %v1180_v2 }
 0x305   :  { %1507 = vmatprep.subr.bf16.mxu1 %v1189_v3 }
 0x308   :  { %1509 = vmatpush3.bf16.msra.mxu1 %v1181_v4 }
 0x309   :  { %1511 = vmatprep.subr.bf16.mxu1 %v1190_v5 }
 0x30c   :  { %1513 = vmatpush3.bf16.msra.mxu1 %v1182_v7 }
 0x3c2   :  { %v748_v41 = vpop.f32.mrb[2].mxu1 }
 0x3c3   :  { %v749_v42 = vadd.f32 %v748_v41, %v675_v39  ;;  %v750_v43 = vpop.f32.mrb[3].mxu1 }
 0x3c4   :  { %v751_v44 = vadd.f32 %v750_v43, %v679_v40 }
 0x3c5   :  { %v753_v46 = vmax.f32 %v749_v42, 0.0 }
 0x3c6   :  { %v754_v45 = vmax.f32 %v751_v44, 0.0 }
 0x3c8   :  { %927 = vmatprep.mubr.f32.mxu0 %v754_v45 }
 0x3c9   :  { %928 = vmatmul.mubr.f32.vlgmr.msra.gmra.mrb[4].mxu0 %v753_v46 }
 0x49c   :  { %v929_v58 = vpop.f32.mrb[4].mxu0 }
 0x49d   :  { %v930_v59 = vadd.f32 %v929_v58, %v856_v56  ;;  %v931_v60 = vpop.f32.mrb[5].mxu0 }
 0x49e   :  { %v932_v61 = vadd.f32 %v931_v60, %v860_v57 }
 0x4a0   :  { %v934_v62 = vmax.f32 %v930_v59, %v932_v61 }
 0x4a2   :  { %935 = vmax.xlane.f32.xlu0 %v934_v62 }
 0x52f   :  { %v936_v6 = vpop.xlane.xlu0 %935 }
 0x530   :  { %v937_v8 = vsub.f32 %v930_v59, %v936_v6  ;;  %v938_v9 = vsub.f32 %v932_v61, %v936_v6 }
 0x532   :  { %v939_v10 = vmul.f32 1.442695, %v937_v8  ;;  %v941_v11 = vmul.f32 1.442695, %v938_v9 }
 0x534   :  { %1845 = vpow2.f32 %v939_v10 }
 0x535   :  { %1847 = vpow2.f32 %v941_v11 }
 0x53e   :  { %v1846_v12 = vpop.eup %1845 }
 0x53f   :  { %v1848_v13 = vpop.eup %1847 }
 0x540   :  { %1074 = vmatprep.mubr.f32.mxu1 %v1848_v13  ;;  %v943_v14 = vadd.f32 %v1848_v13, %v1846_v12 }
 0x541   :  { %1075 = vmatmul.mubr.f32.vlgmr.msra.gmra.mrb[4].mxu1 %v1846_v12 }
 0x542   :  { %944 = vadd.xlane.f32.xlu0 %v943_v14 }
 0x5cf   :  { %v945_v15 = vpop.xlane.xlu0 %944 }
 0x5d0   :  { %1849 = vrcp.f32 %v945_v15 }
 0x5da   :  { %v1850_v19 = vpop.eup %1849 }
 0x614   :  { %v1223_v16 = vpop.f32.mrb[4].mxu1 }
 0x615   :  { %v1224_v17 = vpop.f32.mrb[5].mxu1 }
 0x616   :  { %v1225_v18 = vadd.f32 %v1224_v17, %v1223_v16 }
 0x618   :  { %v1081_v21 = vmul.f32 %v1850_v19, %v1225_v18 }
 0x61a   :  { %v1089_v22 = vadd.f32 %v1111_v20, %v1081_v21 }
 0x61c   :  { %1090 = vst [vmem:[#allocation11] sm:$0xff] %v1089_v22 }
 0x61d   :  { %1972 = shalt.err (!%p1969_p2)
}
 0x61e   :  { %s1973_s15 = scalar_lea.hbm %s2221_s13, 128 }
 0x61f   :  { %p1974_p3 = scmp.ne.s32.totalorder %s2221_s13, %s1973_s15  ;;  %p1977_p4 = scmp.lt.u32.totalorder %s1973_s15, %s2221_s13 }
 0x621   :  { %p1979_p5 = pnand %p1977_p4, %p1974_p3 }
 0x623   :  { %1982 = shalt.err (!%p1979_p5)
}
 0x624   :  { %1100 = dma.vmem_to_hbm [thread:$0]  %s1098_s30, 128, %s2221_s13, [#allocation4]  }
 0x625   :  { %1989 = dma.done.wait [#allocation4], 128  }
 0x626   :  { %1990 = vsyncadd [#allocation4], 4294967168 }
 0x627   :  { %1104 = vsyncpa [#allocation3], 1 }
 0x628   :  { %1105 = vsyncpa [#allocation6], 1 }
 0x629   :  { %1106 = vsyncpa [#allocation9], 1 }
 0x62a   :  { %1107 = vsyncpa [#allocation4], 1 }

</bundles_post_ra>
